<compile_context>
chip_gen: v6e
topology: v6e:2x2x1
jax: 0.10.0
libtpu: 0.0.40
codegen_flags: <defaults>
</compile_context>

<pallas_src>
import functools

import numpy as np
import jax
import jax.numpy as jnp
from jax import lax
from jax.experimental import pallas as pl
from jax.experimental.pallas import tpu as pltpu

_LANE = 128
_TARGET_BLOCK_BYTES = 2 * 1024 * 1024   # ~2 MiB of useful input bytes / block
_MAX_LANES = 128 * 1024                 # sanity cap on tile width


def _round_up(x, m):
    return ((x + m - 1) // m) * m


def _sublane_mult(itemsize):
    if itemsize >= 4:
        return 8
    if itemsize == 2:
        return 16
    return 32


def _chip_config():
    """Returns (n_cores, per_core_vmem_budget_bytes, vmem_limit_bytes)."""
    kind = ""
    try:
        kind = (getattr(jax.devices()[0], "device_kind", "") or "").lower()
    except Exception:
        pass
    # Two TensorCores per chip (megacore v4/v5p, v7x) -> split features across
    # cores via a "parallel" leading grid axis; single-TC chips get a size-1
    # axis (near-zero overhead).
    two_tc = ("v4" in kind) or ("v5p" in kind) or ("7" in kind)
    n_cores = 2 if two_tc else 1
    if "7" in kind:
        budget, limit = 24 << 20, 48 << 20      # v7x: 64 MiB VMEM per TC
    elif ("v6" in kind) or ("v5" in kind) or ("v4" in kind):
        budget, limit = 40 << 20, 64 << 20      # 128 MiB physical VMEM
    else:
        budget, limit = 16 << 20, 32 << 20      # unknown: stay conservative
    try:
        cap = getattr(pltpu.get_tpu_info(), "vmem_capacity_bytes", None)
        if cap:
            limit = min(limit, int(cap) * 3 // 4)
            budget = min(budget, max(limit - (8 << 20), 8 << 20))
    except Exception:
        pass
    return n_cores, budget, limit


def _choose_tf(B, F, itemsize_a, itemsize_b, budget_bytes, masked):
    """Feature-axis tile width (multiple of 128), dtype/sublane-aware."""
    f_lanes = _round_up(F, _LANE)

    # Physical (sublane-padded) VMEM bytes per lane of TF.
    rows_a = _round_up(B, _sublane_mult(itemsize_a))
    rows_b = _round_up(B, _sublane_mult(itemsize_b))
    rows_acc = _round_up(B, 8)
    per_lane = 2 * rows_a * itemsize_a + 2 * rows_b * itemsize_b  # dbl-buffered
    per_lane += rows_acc * 4                                      # accumulator
    if masked:
        per_lane += 2 * 8 * 4                # (1, TF) f32 mask, dbl-buffered

    # Target ~_TARGET_BLOCK_BYTES of *useful* input bytes per block.
    tf_target = _TARGET_BLOCK_BYTES // max(1, B * max(itemsize_a, itemsize_b))
    tf_budget = budget_bytes // per_lane

    tf = min(f_lanes, tf_target, tf_budget, _MAX_LANES)
    # TODO(synk): for extremely large B the 128-lane floor may exceed the VMEM
    #   budget; tile the batch axis as well in that case.
    tf = max(_LANE, (tf // _LANE) * _LANE)
    return int(tf)


def _sq_err_kernel(*refs, F, TF, n_chunks, chunks_per_core, masked):
    # refs = (a, b, [mask], out, acc)
    if masked:
        a_ref, b_ref, m_ref, o_ref, acc_ref = refs
    else:
        a_ref, b_ref, o_ref, acc_ref = refs

    c = pl.program_id(0)   # core-split axis ("parallel")
    j = pl.program_id(1)   # reduction axis ("arbitrary")

    @pl.when(j == 0)
    def _():
        acc_ref[...] = jnp.zeros_like(acc_ref)

    d = a_ref[...].astype(jnp.float32) - b_ref[...].astype(jnp.float32)
    sq = d * d

    if masked:
        # Ragged tail + duplicated (clamped) blocks are handled by the
        # zero-padded host mask, so the hot loop is a single select + add.
        # (Keep jnp.where, not a multiply: padded-tail garbage may be NaN.)
        acc_ref[...] += jnp.where(m_ref[...] > jnp.float32(0.5),
                                  sq, jnp.float32(0.0))
    else:
        chunk = c * chunks_per_core + j

        @pl.when(chunk < n_chunks - 1)
        def _():
            # Interior chunk: plain VPU add, no masking at all.
            acc_ref[...] += sq

        @pl.when(chunk == n_chunks - 1)
        def _():
            # Last (possibly ragged) chunk: iota lane mask only here.
            col = (n_chunks - 1) * TF + lax.broadcasted_iota(jnp.int32,
                                                             sq.shape, 1)
            acc_ref[...] += jnp.where(col < F, sq, jnp.float32(0.0))
        # chunk >= n_chunks (duplicated block on the 2-core split): no-op.

    @pl.when(j == pl.num_programs(1) - 1)
    def _():
        # Single cross-lane/sublane reduction per core, done once.
        o_ref[0, 0] = jnp.sum(acc_ref[...])


def _sq_err_sum(a, b, mask_idx=None):
    """Sum over valid elements of (a - b)^2.

    a, b     : [B, F] equal-shaped arrays (any float dtype).
    mask_idx : optional numpy int array of unique column indices; fused into
               the kernel as a zero-padded (1, W) 0/1 float32 vector.
    Returns a float32 scalar (sum, not mean).
    """
    assert a.shape == b.shape
    B, F = a.shape
    masked = mask_idx is not None

    n_cores, budget, vmem_limit = _chip_config()
    isa = jnp.dtype(a.dtype).itemsize
    isb = jnp.dtype(b.dtype).itemsize
    TF = _choose_tf(B, F, isa, isb, budget, masked)

    n_chunks = pl.cdiv(F, TF)
    n_cores = min(n_cores, n_chunks)
    chunks_per_core = pl.cdiv(n_chunks, n_cores)

    def data_idx(c, j):
        # Clamp so the DMA never targets a fully out-of-range block; the
        # duplicated block contributes nothing (zero mask / pl.when guard).
        return (0, jnp.minimum(c * chunks_per_core + j, n_chunks - 1))

    in_specs = [pl.BlockSpec((B, TF), data_idx),
                pl.BlockSpec((B, TF), data_idx)]
    args = [a, b]
    if masked:
        # Host-built 0/1 mask padded with zeros out to the full tiled width:
        # ragged tail and duplicated blocks fall on zero-mask columns.
        padded_w = n_cores * chunks_per_core * TF
        mvec = np.zeros((1, padded_w), dtype=np.float32)
        mvec[0, np.asarray(mask_idx, dtype=np.int64)] = 1.0
        in_specs.append(
            pl.BlockSpec((1, TF), lambda c, j: (0, c * chunks_per_core + j)))
        args.append(jnp.asarray(mvec))

    kernel = functools.partial(_sq_err_kernel, F=F, TF=TF, n_chunks=n_chunks,
                               chunks_per_core=chunks_per_core, masked=masked)

    partials = pl.pallas_call(
        kernel,
        out_shape=jax.ShapeDtypeStruct((n_cores, 1), jnp.float32),
        grid_spec=pltpu.PrefetchScalarGridSpec(
            num_scalar_prefetch=0,
            grid=(n_cores, chunks_per_core),
            in_specs=in_specs,
            out_specs=pl.BlockSpec((1, 1), lambda c, j: (c, 0),
                                   memory_space=pltpu.SMEM),
            scratch_shapes=[pltpu.VMEM((B, TF), jnp.float32)],
        ),
        compiler_params=pltpu.CompilerParams(
            dimension_semantics=("parallel", "arbitrary"),
            vmem_limit_bytes=int(vmem_limit)),
    )(*args)
    return jnp.sum(partials)


def _arith_progression(idx):
    """Return (start, step) if idx is a strictly increasing arithmetic
    progression, else None."""
    if idx.size == 0:
        return None
    if idx.size == 1:
        return int(idx[0]), 1
    d = np.diff(idx)
    if d.size and np.all(d == d[0]) and d[0] > 0:
        return int(idx[0]), int(d[0])
    return None


def _select_columns(x, idx):
    """x[:, idx] without a general gather when idx is stride-regular."""
    prog = _arith_progression(idx)
    if prog is not None:
        start, step = prog
        stop = start + step * (len(idx) - 1) + 1
        return lax.slice(x, (0, start), (x.shape[0], stop), (1, step))
    # TODO(synk): fuse arbitrary-index column selection into the kernel via a
    #   scalar-prefetched index table + per-block DMA instead of this gather.
    return jnp.take(x, jnp.asarray(idx), axis=1)


def mean_squared_error(y_pred, y_true, mask, local):
    """JAX/Pallas equivalent of MeanSquaredError.forward.

    mask: static integer indices (or boolean mask) selecting features of dim 1.
    """
    mask = np.asarray(mask)
    mask_idx = (np.flatnonzero(mask) if mask.dtype == np.bool_
                else mask.astype(np.int64).ravel())
    n_mask = int(mask_idx.size)
    unique_ok = np.unique(mask_idx).size == n_mask

    y_pred = jnp.asarray(y_pred)
    y_true = jnp.asarray(y_true)
    B = y_true.shape[0]
    denom = B * n_mask

    if local:
        if y_pred.shape == y_true.shape and unique_ok:
            # Fast path: fuse the static mask into the kernel (no gather, no
            # pad of the data inputs, no extra HBM round trip).
            total = _sq_err_sum(y_pred, y_true, mask_idx=mask_idx)
        else:
            total = _sq_err_sum(_select_columns(y_pred, mask_idx),
                                _select_columns(y_true, mask_idx))
    else:
        assert y_pred.shape[1] == n_mask, (
            "local=False expects y_pred.shape[1] == len(mask)")
        total = _sq_err_sum(y_pred, _select_columns(y_true, mask_idx))

    return total / jnp.float32(denom)


if __name__ == "__main__":
    key = jax.random.PRNGKey(0)
    k1, k2 = jax.random.split(key)

    B = 2
    F_total = 300                        # total feature width of y_true
    mask_idx = np.arange(0, F_total, 2)  # deterministic mask: even features

    # ---- local=True case: y_pred has full width, both are masked ----
    y_pred_full = jax.random.normal(k1, (B, F_total), dtype=jnp.float32)
    y_true = jax.random.normal(k2, (B, F_total), dtype=jnp.float32)

    out_local = mean_squared_error(y_pred_full, y_true, mask_idx, local=True)
    out_local = jax.block_until_ready(out_local)
    ref_local = jnp.mean((y_pred_full[:, mask_idx] - y_true[:, mask_idx]) ** 2)
    assert np.allclose(np.asarray(out_local), np.asarray(ref_local),
                       rtol=1e-5, atol=1e-5)

    # ---- local=False case: y_pred already has masked width ----
    y_pred_masked = y_pred_full[:, mask_idx]
    out_global = mean_squared_error(y_pred_masked, y_true, mask_idx, local=False)
    out_global = jax.block_until_ready(out_global)
    ref_global = jnp.mean((y_pred_masked - y_true[:, mask_idx]) ** 2)
    assert np.allclose(np.asarray(out_global), np.asarray(ref_global),
                       rtol=1e-5, atol=1e-5)

    print("KERNEL_OK")
</pallas_src>

<mosaic_0001>
module attributes {stable_mosaic.version = 11 : i64} {
  func.func @_sq_err_kernel(%arg0: i32, %arg1: i32, %arg2: memref<2x384xf32, #tpu.memory_space<vmem>>, %arg3: memref<2x384xf32, #tpu.memory_space<vmem>>, %arg4: memref<1x384xf32, #tpu.memory_space<vmem>>, %arg5: memref<1x1xf32, #tpu.memory_space<smem>>, %arg6: memref<2x384xf32, #tpu.memory_space<vmem>>) attributes {dimension_semantics = [#tpu.dimension_semantics<parallel>, #tpu.dimension_semantics<arbitrary>], iteration_bounds = array<i64: 1, 1>, scalar_prefetch = 0 : i64, scratch_operands = 1 : i64, tpu.core_type = #tpu.core_type<tc>, window_params = [{transform_indices = @transform_0, window_bounds = array<i64: 2, 384>}, {transform_indices = @transform_1, window_bounds = array<i64: 2, 384>}, {transform_indices = @transform_2, window_bounds = array<i64: 1, 384>}, {transform_indices = @transform_3, window_bounds = array<i64: 1, 1>}]} {
    %c0_i32 = arith.constant 0 : i32
    %0 = arith.cmpi eq, %arg1, %c0_i32 : i32
    %1 = arith.extui %0 : i1 to i32
    %c0_i32_0 = arith.constant 0 : i32
    %2 = arith.cmpi ne, %1, %c0_i32_0 : i32
    scf.if %2 {
      %cst_13 = arith.constant 0.000000e+00 : f32
      %20 = vector.broadcast %cst_13 : f32 to vector<2x384xf32>
      %c0_14 = arith.constant 0 : index
      %c0_15 = arith.constant 0 : index
      %21 = vector.load %arg6[%c0_14, %c0_15] : memref<2x384xf32, #tpu.memory_space<vmem>>, vector<2x384xf32>
      tpu.vector_store %arg6[%c0_14, %c0_15], %20 {strides = array<i32>} : memref<2x384xf32, #tpu.memory_space<vmem>>, vector<2x384xf32>,
    } else {
    }
    %c0 = arith.constant 0 : index
    %c0_1 = arith.constant 0 : index
    %3 = vector.load %arg2[%c0, %c0_1] : memref<2x384xf32, #tpu.memory_space<vmem>>, vector<2x384xf32>
    %c0_2 = arith.constant 0 : index
    %c0_3 = arith.constant 0 : index
    %4 = vector.load %arg3[%c0_2, %c0_3] : memref<2x384xf32, #tpu.memory_space<vmem>>, vector<2x384xf32>
    %5 = arith.subf %3, %4 : vector<2x384xf32>
    %6 = arith.mulf %5, %5 : vector<2x384xf32>
    %c0_4 = arith.constant 0 : index
    %c0_5 = arith.constant 0 : index
    %7 = vector.load %arg6[%c0_4, %c0_5] : memref<2x384xf32, #tpu.memory_space<vmem>>, vector<2x384xf32>
    %c0_6 = arith.constant 0 : index
    %c0_7 = arith.constant 0 : index
    %8 = vector.load %arg4[%c0_6, %c0_7] : memref<1x384xf32, #tpu.memory_space<vmem>>, vector<1x384xf32>
    %cst = arith.constant 5.000000e-01 : f32
    %9 = vector.broadcast %cst : f32 to vector<1x384xf32>
    %10 = arith.cmpf ogt, %8, %9 : vector<1x384xf32>
    %cst_8 = arith.constant 0.000000e+00 : f32
    %11 = vector.shape_cast %10 : vector<1x384xi1> to vector<1x384xi1>
    %12 = vector.broadcast %11 : vector<1x384xi1> to vector<2x384xi1>
    %13 = vector.broadcast %cst_8 : f32 to vector<2x384xf32>
    %14 = arith.select %12, %6, %13 : vector<2x384xi1>, vector<2x384xf32>
    %15 = arith.addf %7, %14 : vector<2x384xf32>
    %c0_9 = arith.constant 0 : index
    %c0_10 = arith.constant 0 : index
    %16 = vector.load %arg6[%c0_9, %c0_10] : memref<2x384xf32, #tpu.memory_space<vmem>>, vector<2x384xf32>
    tpu.vector_store %arg6[%c0_9, %c0_10], %15 {strides = array<i32>} : memref<2x384xf32, #tpu.memory_space<vmem>>, vector<2x384xf32>,
    %c0_i32_11 = arith.constant 0 : i32
    %17 = arith.cmpi eq, %arg1, %c0_i32_11 : i32
    %18 = arith.extui %17 : i1 to i32
    %c0_i32_12 = arith.constant 0 : i32
    %19 = arith.cmpi ne, %18, %c0_i32_12 : i32
    scf.if %19 {
      %c0_13 = arith.constant 0 : index
      %c0_14 = arith.constant 0 : index
      %20 = vector.load %arg6[%c0_13, %c0_14] : memref<2x384xf32, #tpu.memory_space<vmem>>, vector<2x384xf32>
      %21 = vector.shape_cast %20 : vector<2x384xf32> to vector<1x2x384xf32>
      %cst_15 = arith.constant dense<0.000000e+00> : vector<1xf32>
      %22 = vector.multi_reduction <add>, %21, %cst_15 [1, 2] : vector<1x2x384xf32> to vector<1xf32>
      %23 = vector.shape_cast %22 : vector<1xf32> to vector<1x1x1xf32>
      %24 = vector.extract %23[0, 0, 0] : f32 from vector<1x1x1xf32>
      %c0_16 = arith.constant 0 : index
      %c0_17 = arith.constant 0 : index
      %25 = memref.load %arg5[%c0_16, %c0_17] : memref<1x1xf32, #tpu.memory_space<smem>>
      memref.store %24, %arg5[%c0_16, %c0_17] : memref<1x1xf32, #tpu.memory_space<smem>>
    } else {
    }
    return
  }
  func.func @transform_0(%arg0: i32, %arg1: i32) -> (i32, i32) {
    %c1_i32 = arith.constant 1 : i32
    %0 = arith.muli %arg0, %c1_i32 : i32
    %1 = arith.addi %0, %arg1 : i32
    %c0_i32 = arith.constant 0 : i32
    %2 = arith.minsi %1, %c0_i32 : i32
    %c0_i32_0 = arith.constant 0 : i32
    %c0_i32_1 = arith.constant 0 : i32
    return %c0_i32_0, %2 : i32, i32
  }
  func.func @transform_1(%arg0: i32, %arg1: i32) -> (i32, i32) {
    %c1_i32 = arith.constant 1 : i32
    %0 = arith.muli %arg0, %c1_i32 : i32
    %1 = arith.addi %0, %arg1 : i32
    %c0_i32 = arith.constant 0 : i32
    %2 = arith.minsi %1, %c0_i32 : i32
    %c0_i32_0 = arith.constant 0 : i32
    %c0_i32_1 = arith.constant 0 : i32
    return %c0_i32_0, %2 : i32, i32
  }
  func.func @transform_2(%arg0: i32, %arg1: i32) -> (i32, i32) {
    %c1_i32 = arith.constant 1 : i32
    %0 = arith.muli %arg0, %c1_i32 : i32
    %1 = arith.addi %0, %arg1 : i32
    %c0_i32 = arith.constant 0 : i32
    %c0_i32_0 = arith.constant 0 : i32
    return %c0_i32, %1 : i32, i32
  }
  func.func @transform_3(%arg0: i32, %arg1: i32) -> (i32, i32) {
    %c0_i32 = arith.constant 0 : i32
    %c0_i32_0 = arith.constant 0 : i32
    return %arg0, %c0_i32 : i32, i32
  }
}

</mosaic_0001>

<bundles_post_ra>
// kernel: tpu_custom_call.1
= control target key start
LH: loop header
LB: loop body
LE: loop exit
PB: predicated region body
PF: predicated region fallthrough
CT: control target
= control target key end

     0   :  { %8 = vsyncpa [#allocation4], 0  ;;  %s315_s0 = inlined_call_operand.hbm [shape: f32[2,300], index: 0, kind: input, shape index: {}]   ;;  %s316_s1 = inlined_call_operand.hbm [shape: f32[2,300], index: 1, kind: input, shape index: {}]   ;;  %s317_s2 = inlined_call_operand.vmem [shape: f32[1,384], index: 2, kind: input, shape index: {}]   ;;  %s318_s3 = inlined_call_operand.hbm [shape: f32[1,1], index: 3, kind: output, shape index: {}]  }
   0x1   :  { %9 = vsyncpa [#allocation7], 0 }
   0x2   :  { %10 = vsyncpa [#allocation5], 0  ;;  %s277_s12 = smov [#allocation3]   ;;  %s278_s14 = smov [#allocation6]  }
   0x3   :  { %s23_s13 = sshll.u32 %s277_s12, 4  ;;  %s39_s15 = sshll.u32 %s278_s14, 4  ;;  %s24_s13 = int_to_ptr.vmem [resolvable:$true] %s23_s13  ;;  %s40_s15 = int_to_ptr.vmem [resolvable:$true] %s39_s15 }
   0x4   :  { %s231_s16 = scalar_lea.vmem %s24_s13, 96  ;;  %p236_p1 = scmp.lt.s32.totalorder %s24_s13, %s24_s13 }
   0x5   :  { %p232_p0 = scmp.ne.s32.totalorder %s24_s13, %s231_s16  ;;  %p237_p2 = scmp.lt.s32.totalorder %s231_s16, %s231_s16 }
   0x7   :  { %p238_p3 = por %p237_p2, %p236_p1 }
   0x9   :  { %p239_p4 = pnand %p238_p3, %p232_p0 }
   0xb   :  { %242 = shalt.err (!%p239_p4)
}
   0xc   :  { %26 = dma.hbm_to_vmem [thread:$0]  %s315_s0, 96, %s24_s13, [#allocation4]  }
   0xd   :  { %s251_s19 = scalar_lea.vmem %s40_s15, 96  ;;  %p256_p6 = scmp.lt.s32.totalorder %s40_s15, %s40_s15 }
   0xe   :  { %p252_p5 = scmp.ne.s32.totalorder %s40_s15, %s251_s19  ;;  %p257_p7 = scmp.lt.s32.totalorder %s251_s19, %s251_s19 }
  0x10   :  { %p258_p8 = por %p257_p7, %p256_p6 }
  0x12   :  { %p259_p9 = pnand %p258_p8, %p252_p5 }
  0x14   :  { %262 = shalt.err (!%p259_p9)
}
  0x15   :  { %42 = dma.hbm_to_vmem [thread:$0]  %s316_s1, 96, %s40_s15, [#allocation7]  }
  0x16   :  { %271 = dma.done.wait [#allocation4], 96  }
  0x17   :  { %272 = vsyncadd [#allocation4], 4294967200 }
  0x18   :  { %273 = dma.done.wait [#allocation7], 96  }
  0x19   :  { %274 = vsyncadd [#allocation7], 4294967200  ;;  %v91_v0 = vlaneseq  ;;  %v279_v1 = vmov 0.0   ;;  %v280_v2 = vmov 1983009808   ;;  %v281_v13 = vmov 0  }
  0x1a   :  { %82 = vst [vmem:[#allocation2] sm:$0x3f] %v279_v1  ;;  %v109_v3 = vunpack.c.l.s4 %v280_v2  ;;  %v83_v9 = vld [vmem:[#allocation3] sm:$0x3f]  ;;  %v84_v10 = vld [vmem:[#allocation6] sm:$0x3f] }
  0x1b   :  { %v92_v4 = vshrl.u32 %v91_v0, 7  ;;  %v88_v11 = vld [vmem:[%s317_s2] sm:$0x7]  ;;  %v85_v12 = vsub.f32 %v83_v9, %v84_v10  ;;  %vm175_vm4 = vcmask 1041408   ;;  %s282_s2 = smov [#allocation8]  }
  0x1c   :  { %v110_v5 = vunpack.c.0.s8 %v109_v3  ;;  %vm89_vm0 = vcmp.gt.f32.partialorder %v88_v11, 0.5 }
  0x1d   :  { %v93_v6 = vsub.s32 0, %v92_v4  ;;  %v97_v7 = vsub.s32 1, %v92_v4  ;;  %v101_v8 = vsub.s32 2, %v92_v4  ;;  %v90_v14 = vsel %vm89_vm0, 1, %v281_v13 }
  0x1e   :  { %v113_v15 = vsub.s32 %v110_v5, %v92_v4  ;;  %v86_v16 = vmul.f32 %v85_v12, %v85_v12 }
  0x1f   :  { %v94_v17 = vrot.slane %v90_v14, %v93_v6  ;;  %v98_v18 = vrot.slane %v90_v14, %v97_v7  ;;  %v102_v19 = vrot.slane %v90_v14, %v101_v8 }
  0x20   :  { %v107_v20 = vcombine.high %v86_v16, %v86_v16  ;;  %v114_v21 = vrot.slane %v86_v16, %v113_v15 }
  0x21   :  { %vm103_vm1 = vcmp.eq.s32.totalorder %v94_v17, 1  ;;  %vm105_vm2 = vcmp.eq.s32.totalorder %v102_v19, 1  ;;  %vm104_vm3 = vcmp.eq.s32.totalorder %v98_v18, 1  ;;  %v87_v30 = vld [vmem:[#allocation2] sm:$0x3f] }
  0x22   :  { %v121_v22 = vrot.slane %v107_v20, %v113_v15  ;;  %v122_v23 = vcombine.high %v114_v21, %v114_v21  ;;  %v126_v24 = vsel %vm103_vm1, %v114_v21, 0.0 }
  0x24   :  { %v128_v25 = vsel %vm105_vm2, %v121_v22, 0.0  ;;  %v127_v26 = vsel %vm104_vm3, %v122_v23, 0.0 }
  0x25   :  { %v132_v27 = vcombine.low %v126_v24, %v127_v26  ;;  %v146_v28 = vrot.slane %v128_v25, %v113_v15 }
  0x27   :  { %v139_v29 = vrot.slane %v132_v27, %v113_v15 }
  0x29   :  { %v147_v31 = vcombine.low %v139_v29, %v146_v28 }
  0x2b   :  { %v149_v32 = vadd.f32 %v147_v31, %v87_v30 }
  0x2d   :  { %150 = vst [vmem:[#allocation2] sm:$0x3f] %v149_v32 }
  0x34   :  { %v154_v33 = vld [vmem:[#allocation2] sm:$0x3f] }
  0x35   :  { %v156_v34 = vcombine.high %v154_v33, %v154_v33  ;;  %v163_v35 = vrot.slane %v154_v33, %v113_v15 }
  0x37   :  { %v170_v36 = vrot.slane %v156_v34, %v113_v15  ;;  %v171_v37 = vcombine.high %v163_v35, %v163_v35  ;;  %v176_v38 = vsel %vm175_vm4, %v163_v35, 0.0 }
  0x39   :  { %v177_v39 = vsel %vm175_vm4, %v171_v37, 0.0  ;;  %v179_v40 = vsel %vm175_vm4, %v170_v36, 0.0 }
  0x3a   :  { %v178_v41 = vadd.f32 %v177_v39, %v176_v38 }
  0x3c   :  { %v180_v42 = vadd.f32 %v179_v40, %v178_v41 }
  0x3e   :  { %181 = vadd.xlane.f32.xlu0 %v180_v42 }
  0xc7   :  { %v182_v43 = vpop.xlane.xlu0 %181 }
  0xc8   :  { %v183_v44 = vrot.slane %v182_v43, 4 }
  0xca   :  { %v184_v45 = vadd.f32 %v183_v44, %v182_v43 }
  0xcc   :  { %v185_v46 = vrot.slane %v184_v45, 2 }
  0xce   :  { %v186_v47 = vadd.f32 %v185_v46, %v184_v45 }
  0xd0   :  { %v187_v48 = vrot.slane %v186_v47, 1 }
  0xd2   :  { %v188_v49 = vadd.f32 %v187_v48, %v186_v47 }
  0xd4   :  { %214 = vpush %v188_v49 }
 0x105   :  { %s215_s1 = spop %214 }
 0x106   :  { %191 = sst [smem:[#allocation8]] %s215_s1 }
 0x107   :  { %199 = dma.smem_to_hbm %s282_s2, 16, %s318_s3, [#allocation5]  }
 0x108   :  { %275 = dma.done.wait [#allocation5], 16  }
 0x109   :  { %276 = vsyncadd [#allocation5], 4294967280 }
 0x10a   :  { %203 = sfence }
 0x10b   :  { %204 = vsyncpa [#allocation4], 1 }
 0x10c   :  { %205 = vsyncpa [#allocation7], 1 }
 0x10d   :  { %206 = vsyncpa [#allocation5], 1 }

</bundles_post_ra>
